<compile_context>
chip_gen: v7x
topology: tpu7x:2x2x1
jax: 0.10.0
libtpu: 0.0.40
codegen_flags: <defaults>
</compile_context>

<pallas_src>
import jax
import jax.numpy as jnp
from jax.experimental import pallas as pl
from jax.experimental.pallas import tpu as pltpu

LANE = 128   # vreg lane width; padded hidden2 dimension (16 -> 128)
OUT_PAD = 8  # padded output dimension (4 -> 8); small lane-masked store, hidden under DMA slack


def _mlp_kernel(x_ref, w1_ref, b1_ref, w2_ref, b2_ref, w3_ref, b3_ref, o_ref):
    # x_ref: (TB, 768) f32 streamed from HBM; weights bf16 (resident); biases f32.
    # o_ref: (TB, OUT_PAD) f32.
    x = x_ref[...].astype(jnp.bfloat16)                            # in-kernel cast (VPU slack)
    h1 = jnp.dot(x, w1_ref[...], preferred_element_type=jnp.float32)
    h1 = jnp.maximum(h1 + b1_ref[...], 0.0)                        # f32 bias + ReLU
    h2 = jnp.dot(h1.astype(jnp.bfloat16), w2_ref[...],
                 preferred_element_type=jnp.float32)
    h2 = jnp.maximum(h2 + b2_ref[...], 0.0)                        # padded lanes stay exactly 0
    o = jnp.dot(h2.astype(jnp.bfloat16), w3_ref[...],
                preferred_element_type=jnp.float32)
    o_ref[...] = (o + b3_ref[...]).astype(o_ref.dtype)             # narrow 8-lane f32 store


def neural_net_forward(x_nchw, params, *, block_b=1024):
    """x_nchw: (B, 3, 16, 16) float32 -> (B, 4) float32."""
    w1, b1, w2, b2, w3, b3 = params
    B = x_nchw.shape[0]
    d_in, h1_dim = w1.shape          # 768, 128
    h2_dim = w2.shape[1]             # 16
    out_dim = w3.shape[1]            # 4

    # Flatten like torch.flatten(x, 1). No dtype cast here: x streams as f32, cast in-kernel.
    x_flat = x_nchw.reshape(B, -1)

    # Batch tile: multiple of 8 sublanes (f32 input), capped at block_b.
    # At tb=1024: ~2x3 MiB x buffers + weights + f32 intermediates ~= 8 MiB VMEM,
    # comfortably under v5e's 16 MiB scoped default and v7x's 64 MiB physical VMEM.
    tb = min(block_b, max(8, ((B + 7) // 8) * 8))
    grid = (pl.cdiv(B, tb),)         # no jnp.pad copy: Pallas masks the ragged final block

    # Lane-dense zero padding of the narrow layers (exact zeros keep padded lanes exact).
    w1b = w1.astype(jnp.bfloat16)
    b1r = b1.reshape(1, -1).astype(jnp.float32)
    w2p = jnp.zeros((h1_dim, LANE), jnp.bfloat16).at[:, :h2_dim].set(w2.astype(jnp.bfloat16))
    b2p = jnp.zeros((1, LANE), jnp.float32).at[:, :h2_dim].set(b2[None, :].astype(jnp.float32))
    w3p = jnp.zeros((LANE, OUT_PAD), jnp.bfloat16).at[:h2_dim, :out_dim].set(
        w3.astype(jnp.bfloat16))
    b3p = jnp.zeros((1, OUT_PAD), jnp.float32).at[:, :out_dim].set(
        b3[None, :].astype(jnp.float32))

    def resident(shape):
        # Weights / biases: same block every grid step -> stay resident in VMEM.
        return pl.BlockSpec(shape, lambda i: (0, 0))

    flops = 2 * B * (d_in * h1_dim + h1_dim * LANE + LANE * OUT_PAD)
    bytes_accessed = (
        x_flat.size * 4                                   # streamed f32 input
        + (w1b.size + w2p.size + w3p.size) * 2            # bf16 weights (read once, resident)
        + (b1r.size + b2p.size + b3p.size) * 4            # f32 biases
        + B * OUT_PAD * 4                                 # narrow f32 output
    )

    out = pl.pallas_call(
        _mlp_kernel,
        out_shape=jax.ShapeDtypeStruct((B, OUT_PAD), jnp.float32),
        grid=grid,
        in_specs=[
            pl.BlockSpec((tb, d_in), lambda i: (i, 0)),   # streamed, pipelined x tiles (f32)
            resident((d_in, h1_dim)),
            resident((1, h1_dim)),
            resident((h1_dim, LANE)),
            resident((1, LANE)),
            resident((LANE, OUT_PAD)),
            resident((1, OUT_PAD)),
        ],
        out_specs=pl.BlockSpec((tb, OUT_PAD), lambda i: (i, 0)),
        compiler_params=pltpu.CompilerParams(
            dimension_semantics=("parallel",),
        ),
        cost_estimate=pl.CostEstimate(
            flops=flops, transcendentals=0, bytes_accessed=bytes_accessed),
    )(x_flat, w1b, b1r, w2p, b2p, w3p, b3p)

    return out[:, :out_dim]


def init_params(key):
    """Deterministic init matching nn.Linear shapes (stored as (in, out)), f32."""
    k1, k2, k3, k4, k5, k6 = jax.random.split(key, 6)

    def linear_init(kw, kb, fan_in, fan_out):
        bound = 1.0 / jnp.sqrt(jnp.float32(fan_in))
        w = jax.random.uniform(kw, (fan_in, fan_out), jnp.float32, -bound, bound)
        b = jax.random.uniform(kb, (fan_out,), jnp.float32, -bound, bound)
        return w, b

    w1, b1 = linear_init(k1, k2, 768, 128)   # fc1
    w2, b2 = linear_init(k3, k4, 128, 16)    # fc2
    w3, b3 = linear_init(k5, k6, 16, 4)      # out
    return (w1, b1, w2, b2, w3, b3)


def _reference_forward(x_nchw, params):
    w1, b1, w2, b2, w3, b3 = params
    x = x_nchw.reshape(x_nchw.shape[0], -1)
    h1 = jnp.maximum(x @ w1 + b1, 0.0)
    h2 = jnp.maximum(h1 @ w2 + b2, 0.0)
    return h2 @ w3 + b3


if __name__ == "__main__":
    key = jax.random.PRNGKey(0)
    k_params, k_x = jax.random.split(key)

    params = init_params(k_params)
    # Batch=8, channels=3, spatial=16x16 => flatten(1) gives 3*16*16 = 768 features.
    x = jax.random.normal(k_x, (8, 3, 16, 16), jnp.float32)

    y = neural_net_forward(x, params)
    y = jax.block_until_ready(y)

    y_ref = _reference_forward(x, params)
    assert y.shape == (8, 4)
    # bf16 matmul inputs with f32 accumulation -> loose tolerance vs the f32 reference.
    assert jnp.allclose(y, y_ref, atol=3e-2, rtol=3e-2), float(jnp.max(jnp.abs(y - y_ref)))

    print("KERNEL_OK")
</pallas_src>

<mosaic_0001>
module attributes {stable_mosaic.version = 11 : i64} {
  func.func @_mlp_kernel(%arg0: i32, %arg1: memref<8x768xf32, #tpu.memory_space<vmem>>, %arg2: memref<768x128xbf16, #tpu.memory_space<vmem>>, %arg3: memref<1x128xf32, #tpu.memory_space<vmem>>, %arg4: memref<128x128xbf16, #tpu.memory_space<vmem>>, %arg5: memref<1x128xf32, #tpu.memory_space<vmem>>, %arg6: memref<128x8xbf16, #tpu.memory_space<vmem>>, %arg7: memref<1x8xf32, #tpu.memory_space<vmem>>, %arg8: memref<8x8xf32, #tpu.memory_space<vmem>>) attributes {dimension_semantics = [#tpu.dimension_semantics<parallel>], iteration_bounds = array<i64: 1>, scalar_prefetch = 0 : i64, scratch_operands = 0 : i64, tpu.core_type = #tpu.core_type<tc>, window_params = [{transform_indices = @transform_0, window_bounds = array<i64: 8, 768>}, {pipeline_mode = #tpu.pipeline_mode<synchronous>, transform_indices = @transform_1, window_bounds = array<i64: 768, 128>}, {pipeline_mode = #tpu.pipeline_mode<synchronous>, transform_indices = @transform_2, window_bounds = array<i64: 1, 128>}, {pipeline_mode = #tpu.pipeline_mode<synchronous>, transform_indices = @transform_3, window_bounds = array<i64: 128, 128>}, {pipeline_mode = #tpu.pipeline_mode<synchronous>, transform_indices = @transform_4, window_bounds = array<i64: 1, 128>}, {pipeline_mode = #tpu.pipeline_mode<synchronous>, transform_indices = @transform_5, window_bounds = array<i64: 128, 8>}, {pipeline_mode = #tpu.pipeline_mode<synchronous>, transform_indices = @transform_6, window_bounds = array<i64: 1, 8>}, {transform_indices = @transform_7, window_bounds = array<i64: 8, 8>}]} {
    %c0 = arith.constant 0 : index
    %c0_0 = arith.constant 0 : index
    %0 = vector.load %arg1[%c0, %c0_0] : memref<8x768xf32, #tpu.memory_space<vmem>>, vector<8x768xf32>
    %1 = arith.truncf %0 : vector<8x768xf32> to vector<8x768xbf16>
    %c0_1 = arith.constant 0 : index
    %c0_2 = arith.constant 0 : index
    %2 = vector.load %arg2[%c0_1, %c0_2] : memref<768x128xbf16, #tpu.memory_space<vmem>>, vector<768x128xbf16>
    %cst = arith.constant dense<0.000000e+00> : vector<8x128xf32>
    %3 = tpu.matmul %1, %2, %cst {dimension_numbers = #tpu.dot_dimension_numbers<[1], [0], [0], [1], [0, 0, 1, 1], [], []>} : vector<8x768xbf16>, vector<768x128xbf16>, vector<8x128xf32> -> vector<8x128xf32>
    %c0_3 = arith.constant 0 : index
    %c0_4 = arith.constant 0 : index
    %4 = vector.load %arg3[%c0_3, %c0_4] : memref<1x128xf32, #tpu.memory_space<vmem>>, vector<1x128xf32>
    %5 = vector.broadcast %4 : vector<1x128xf32> to vector<8x128xf32>
    %6 = arith.addf %3, %5 : vector<8x128xf32>
    %cst_5 = arith.constant 0.000000e+00 : f32
    %7 = vector.broadcast %cst_5 : f32 to vector<8x128xf32>
    %8 = arith.maximumf %6, %7 : vector<8x128xf32>
    %9 = arith.truncf %8 : vector<8x128xf32> to vector<8x128xbf16>
    %c0_6 = arith.constant 0 : index
    %c0_7 = arith.constant 0 : index
    %10 = vector.load %arg4[%c0_6, %c0_7] : memref<128x128xbf16, #tpu.memory_space<vmem>>, vector<128x128xbf16>
    %cst_8 = arith.constant dense<0.000000e+00> : vector<8x128xf32>
    %11 = tpu.matmul %9, %10, %cst_8 {dimension_numbers = #tpu.dot_dimension_numbers<[1], [0], [0], [1], [0, 0, 1, 1], [], []>} : vector<8x128xbf16>, vector<128x128xbf16>, vector<8x128xf32> -> vector<8x128xf32>
    %c0_9 = arith.constant 0 : index
    %c0_10 = arith.constant 0 : index
    %12 = vector.load %arg5[%c0_9, %c0_10] : memref<1x128xf32, #tpu.memory_space<vmem>>, vector<1x128xf32>
    %13 = vector.broadcast %12 : vector<1x128xf32> to vector<8x128xf32>
    %14 = arith.addf %11, %13 : vector<8x128xf32>
    %cst_11 = arith.constant 0.000000e+00 : f32
    %15 = vector.broadcast %cst_11 : f32 to vector<8x128xf32>
    %16 = arith.maximumf %14, %15 : vector<8x128xf32>
    %17 = arith.truncf %16 : vector<8x128xf32> to vector<8x128xbf16>
    %c0_12 = arith.constant 0 : index
    %c0_13 = arith.constant 0 : index
    %18 = vector.load %arg6[%c0_12, %c0_13] : memref<128x8xbf16, #tpu.memory_space<vmem>>, vector<128x8xbf16>
    %cst_14 = arith.constant dense<0.000000e+00> : vector<8x8xf32>
    %19 = tpu.matmul %17, %18, %cst_14 {dimension_numbers = #tpu.dot_dimension_numbers<[1], [0], [0], [1], [0, 0, 1, 1], [], []>} : vector<8x128xbf16>, vector<128x8xbf16>, vector<8x8xf32> -> vector<8x8xf32>
    %c0_15 = arith.constant 0 : index
    %c0_16 = arith.constant 0 : index
    %20 = vector.load %arg7[%c0_15, %c0_16] : memref<1x8xf32, #tpu.memory_space<vmem>>, vector<1x8xf32>
    %21 = vector.broadcast %20 : vector<1x8xf32> to vector<8x8xf32>
    %22 = arith.addf %19, %21 : vector<8x8xf32>
    %c0_17 = arith.constant 0 : index
    %c0_18 = arith.constant 0 : index
    %23 = vector.load %arg8[%c0_17, %c0_18] : memref<8x8xf32, #tpu.memory_space<vmem>>, vector<8x8xf32>
    tpu.vector_store %arg8[%c0_17, %c0_18], %22 {strides = array<i32>} : memref<8x8xf32, #tpu.memory_space<vmem>>, vector<8x8xf32>,
    return
  }
  func.func @transform_0(%arg0: i32) -> (i32, i32) {
    %c0_i32 = arith.constant 0 : i32
    %c0_i32_0 = arith.constant 0 : i32
    return %arg0, %c0_i32 : i32, i32
  }
  func.func @transform_1(%arg0: i32) -> (i32, i32) {
    %c0_i32 = arith.constant 0 : i32
    %c0_i32_0 = arith.constant 0 : i32
    %c0_i32_1 = arith.constant 0 : i32
    return %c0_i32, %c0_i32_0 : i32, i32
  }
  func.func @transform_2(%arg0: i32) -> (i32, i32) {
    %c0_i32 = arith.constant 0 : i32
    %c0_i32_0 = arith.constant 0 : i32
    %c0_i32_1 = arith.constant 0 : i32
    return %c0_i32, %c0_i32_0 : i32, i32
  }
  func.func @transform_3(%arg0: i32) -> (i32, i32) {
    %c0_i32 = arith.constant 0 : i32
    %c0_i32_0 = arith.constant 0 : i32
    %c0_i32_1 = arith.constant 0 : i32
    return %c0_i32, %c0_i32_0 : i32, i32
  }
  func.func @transform_4(%arg0: i32) -> (i32, i32) {
    %c0_i32 = arith.constant 0 : i32
    %c0_i32_0 = arith.constant 0 : i32
    %c0_i32_1 = arith.constant 0 : i32
    return %c0_i32, %c0_i32_0 : i32, i32
  }
  func.func @transform_5(%arg0: i32) -> (i32, i32) {
    %c0_i32 = arith.constant 0 : i32
    %c0_i32_0 = arith.constant 0 : i32
    %c0_i32_1 = arith.constant 0 : i32
    return %c0_i32, %c0_i32_0 : i32, i32
  }
  func.func @transform_6(%arg0: i32) -> (i32, i32) {
    %c0_i32 = arith.constant 0 : i32
    %c0_i32_0 = arith.constant 0 : i32
    %c0_i32_1 = arith.constant 0 : i32
    return %c0_i32, %c0_i32_0 : i32, i32
  }
  func.func @transform_7(%arg0: i32) -> (i32, i32) {
    %c0_i32 = arith.constant 0 : i32
    %c0_i32_0 = arith.constant 0 : i32
    return %arg0, %c0_i32 : i32, i32
  }
}

</mosaic_0001>

<bundles_post_ra>
// kernel: tpu_custom_call.1
= control target key start
LH: loop header
LB: loop body
LE: loop exit
PB: predicated region body
PF: predicated region fallthrough
CT: control target
= control target key end

     0   :  { %12 = vsyncpa [#allocation3], 0  ;;  %s1320_s0 = inlined_call_operand.hbm [shape: f32[8,768], index: 0, kind: input, shape index: {}]   ;;  %s1321_s1 = inlined_call_operand.hbm [shape: bf16[768,128], index: 1, kind: input, shape index: {}]   ;;  %s1322_s2 = inlined_call_operand.vmem [shape: f32[1,128], index: 2, kind: input, shape index: {}]   ;;  %s1323_s3 = inlined_call_operand.vmem [shape: bf16[128,128], index: 3, kind: input, shape index: {}]   ;;  %s1324_s4 = inlined_call_operand.vmem [shape: f32[1,128], index: 4, kind: input, shape index: {}]   ;;  %s1325_s5 = inlined_call_operand.vmem [shape: bf16[128,8], index: 5, kind: input, shape index: {}]   ;;  %s1326_s6 = inlined_call_operand.vmem [shape: f32[1,8], index: 6, kind: input, shape index: {}]   ;;  %s1327_s7 = inlined_call_operand.hbm [shape: f32[8,8], index: 7, kind: output, shape index: {}]  }
   0x1   :  { %13 = vsyncpa [#allocation6], 0 }
   0x2   :  { %14 = vsyncpa [#allocation4], 0  ;;  %s1155_s24 = smov [#allocation2]   ;;  %s1156_s26 = smov [#allocation5]  }
   0x3   :  { %s21_s25 = sshll.u32 %s1155_s24, 4  ;;  %s30_s27 = sshll.u32 %s1156_s26, 4  ;;  %s22_s25 = int_to_ptr.vmem [resolvable:$true] %s21_s25  ;;  %s1202_s27 = int_to_ptr.vmem [resolvable:$true] %s30_s27 }
   0x4   :  { %s1083_s30 = scalar_lea.hbm %s1320_s0, 768 }
   0x5   :  { %p1084_p0 = scmp.ne.s32.totalorder %s1320_s0, %s1083_s30  ;;  %p1087_p1 = scmp.lt.u32.totalorder %s1083_s30, %s1320_s0 }
   0x7   :  { %p1089_p2 = pnand %p1087_p1, %p1084_p0 }
   0x9   :  { %1092 = shalt.err (!%p1089_p2)
}
   0xa   :  { %s1093_s12 = scalar_lea.vmem %s22_s25, 768  ;;  %p1098_p4 = scmp.lt.s32.totalorder %s22_s25, %s22_s25 }
   0xb   :  { %p1094_p3 = scmp.ne.s32.totalorder %s22_s25, %s1093_s12  ;;  %p1099_p5 = scmp.lt.s32.totalorder %s1093_s12, %s1093_s12 }
   0xd   :  { %p1100_p6 = por %p1099_p5, %p1098_p4 }
   0xf   :  { %p1101_p7 = pnand %p1100_p6, %p1094_p3 }
  0x11   :  { %1104 = shalt.err (!%p1101_p7)
}
  0x12   :  { %24 = dma.hbm_to_vmem [thread:$0]  %s1320_s0, 768, %s22_s25, [#allocation3]  }
  0x13   :  { %s1105_s17 = scalar_lea.hbm %s1321_s1, 6144 }
  0x14   :  { %p1106_p8 = scmp.ne.s32.totalorder %s1321_s1, %s1105_s17  ;;  %p1109_p9 = scmp.lt.u32.totalorder %s1105_s17, %s1321_s1 }
  0x16   :  { %p1111_p10 = pnand %p1109_p9, %p1106_p8 }
  0x18   :  { %1114 = shalt.err (!%p1111_p10)
}
  0x19   :  { %s1115_s22 = scalar_lea.vmem %s1202_s27, 6144  ;;  %p1120_p12 = scmp.lt.s32.totalorder %s1202_s27, %s1202_s27 }
  0x1a   :  { %p1116_p11 = scmp.ne.s32.totalorder %s1202_s27, %s1115_s22  ;;  %p1121_p13 = scmp.lt.s32.totalorder %s1115_s22, %s1115_s22 }
  0x1c   :  { %p1122_p0 = por %p1121_p13, %p1120_p12 }
  0x1e   :  { %p1123_p1 = pnand %p1122_p0, %p1116_p11 }
  0x20   :  { %1126 = shalt.err (!%p1123_p1)
}
  0x21   :  { %s1157_s0 = smov 64   ;;  %s1158_s23 = smov 4  }
  0x22   :  { %36 = dma.hbm_to_vmem [thread:$0]  %s1321_s1, 6144, %s1202_s27, [#allocation6], %s1157_s0, %s1157_s0, %s1158_s23  }
  0x23   :  { %1149 = dma.done.wait [#allocation3], 768  }
  0x24   :  { %1150 = vsyncadd [#allocation3], 4294966528 }
  0x25   :  { %1151 = dma.done.wait [#allocation6], 6144  }
  0x26   :  { %1152 = vsyncadd [#allocation6], 4294961152  ;;  %v1019_v0 = vld [vmem:[#allocation5 + $0x40] sm:$0xff]   ;;  %v1023_v4 = vld [vmem:[#allocation5 + $0x48] sm:$0xff]   ;;  %v1159_v61 = vmov 0.0   ;;  %vm1160_vm0 = vmmov 0  }
  0x27   :  { %v1020_v1 = vld [vmem:[#allocation5] sm:$0xff]   ;;  %888 = vmatprep.subr.bf16.mxu0 %v1019_v0  ;;  %v1024_v5 = vld [vmem:[#allocation5 + $0x8] sm:$0xff]   ;;  %v1027_v8 = vld [vmem:[#allocation5 + $0x50] sm:$0xff]   ;;  %s1161_s13 = smov [#allocation7]   ;;  %vm803_vm1 = vcmask 64512  }
  0x28   :  { %v1021_v2 = vld [vmem:[#allocation5 + $0xc0] sm:$0xff]   ;;  %889 = vmatpush3.bf16.msra.mxu0 %v1020_v1  ;;  %v1025_v6 = vld [vmem:[#allocation5 + $0xc8] sm:$0xff]   ;;  %v1028_v9 = vld [vmem:[#allocation5 + $0x10] sm:$0xff]   ;;  %s811_s14 = sshll.u32 %s1161_s13, 4  ;;  %s812_s14 = int_to_ptr.vmem [resolvable:$true] %s811_s14 }
  0x29   :  { %v1022_v3 = vld [vmem:[#allocation5 + $0x80] sm:$0xff]   ;;  %910 = vmatprep.subr.bf16.mxu1 %v1021_v2  ;;  %890 = vmatprep.subr.bf16.mxu0 %v1023_v4  ;;  %v1026_v7 = vld [vmem:[#allocation5 + $0x88] sm:$0xff]   ;;  %v1029_v10 = vld [vmem:[#allocation5 + $0xd0] sm:$0xff]   ;;  %p1132_p3 = scmp.lt.s32.totalorder %s812_s14, %s812_s14 }
  0x2a   :  { %911 = vmatpush3.bf16.msra.mxu1 %v1022_v3  ;;  %v1030_v11 = vld [vmem:[#allocation5 + $0x90] sm:$0xff]   ;;  %v1031_v12 = vld [vmem:[#allocation5 + $0x58] sm:$0xff]   ;;  %v1035_v16 = vld [vmem:[#allocation5 + $0x60] sm:$0xff]  }
  0x2b   :  { %912 = vmatprep.subr.bf16.mxu1 %v1025_v6  ;;  %v1032_v13 = vld [vmem:[#allocation5 + $0x18] sm:$0xff]   ;;  %v1036_v17 = vld [vmem:[#allocation5 + $0x20] sm:$0xff]   ;;  %v1039_v20 = vld [vmem:[#allocation5 + $0x68] sm:$0xff]  }
  0x2c   :  { %891 = vmatpush3.bf16.msra.mxu0 %v1024_v5  ;;  %v1033_v14 = vld [vmem:[#allocation5 + $0xd8] sm:$0xff]   ;;  %v1037_v18 = vld [vmem:[#allocation5 + $0xe0] sm:$0xff]   ;;  %v1040_v21 = vld [vmem:[#allocation5 + $0x28] sm:$0xff]  }
  0x2d   :  { %892 = vmatprep.subr.bf16.mxu0 %v1027_v8  ;;  %v1034_v15 = vld [vmem:[#allocation5 + $0x98] sm:$0xff]   ;;  %v1038_v19 = vld [vmem:[#allocation5 + $0xa0] sm:$0xff]   ;;  %v1041_v22 = vld [vmem:[#allocation5 + $0xe8] sm:$0xff]  }
  0x2e   :  { %913 = vmatpush3.bf16.msra.mxu1 %v1026_v7  ;;  %v1042_v23 = vld [vmem:[#allocation5 + $0xa8] sm:$0xff]   ;;  %v1043_v24 = vld [vmem:[#allocation5 + $0x70] sm:$0xff]   ;;  %v1047_v28 = vld [vmem:[#allocation5 + $0x78] sm:$0xff]  }
  0x2f   :  { %914 = vmatprep.subr.bf16.mxu1 %v1029_v10  ;;  %v1044_v25 = vld [vmem:[#allocation5 + $0x30] sm:$0xff]   ;;  %v1048_v29 = vld [vmem:[#allocation5 + $0x38] sm:$0xff]   ;;  %v1051_v36 = vld [vmem:[#allocation5 + $0x140] sm:$0xff]  }
  0x30   :  { %893 = vmatpush3.bf16.msra.mxu0 %v1028_v9  ;;  %v1045_v26 = vld [vmem:[#allocation5 + $0xf0] sm:$0xff]   ;;  %v1049_v30 = vld [vmem:[#allocation5 + $0xf8] sm:$0xff]   ;;  %v57_v37 = vld [vmem:[#allocation2 + $0x18] sm:$0xff] }
  0x31   :  { %894 = vmatprep.subr.bf16.mxu0 %v1031_v12  ;;  %v1046_v27 = vld [vmem:[#allocation5 + $0xb0] sm:$0xff]   ;;  %v55_v31 = vld [vmem:[#allocation2 + $0x8] sm:$0xff]  ;;  %v63_v38 = vpack.c.bf16 %v57_v37, %v57_v37  ;;  %v1052_v39 = vld [vmem:[#allocation5 + $0x100] sm:$0xff]  }
  0x32   :  { %915 = vmatpush3.bf16.msra.mxu1 %v1030_v11  ;;  %v61_v32 = vpack.c.bf16 %v55_v31, %v55_v31  ;;  %v1050_v33 = vld [vmem:[#allocation5 + $0xb8] sm:$0xff]   ;;  %v54_v34 = vld [vmem:[#allocation2] sm:$0xff]  ;;  %v56_v40 = vld [vmem:[#allocation2 + $0x10] sm:$0xff] }
  0x33   :  { %916 = vmatprep.subr.bf16.mxu1 %v1033_v14  ;;  %v60_v35 = vpack.c.bf16 %v54_v34, %v54_v34  ;;  %529 = vmatprep.mubr.bf16.mxu1 %v63_v38  ;;  %v62_v41 = vpack.c.bf16 %v56_v40, %v56_v40  ;;  %v1053_v42 = vld [vmem:[#allocation5 + $0x148] sm:$0xff]   ;;  %v1055_v44 = vld [vmem:[#allocation5 + $0x150] sm:$0xff]   ;;  %v1057_v46 = vld [vmem:[#allocation5 + $0x158] sm:$0xff]  }
  0x34   :  { %895 = vmatpush3.bf16.msra.mxu0 %v1032_v13  ;;  %489 = vmatprep.mubr.bf16.mxu0 %v61_v32  ;;  %v1054_v43 = vld [vmem:[#allocation5 + $0x108] sm:$0xff]   ;;  %v1056_v45 = vld [vmem:[#allocation5 + $0x110] sm:$0xff]   ;;  %v1058_v47 = vld [vmem:[#allocation5 + $0x118] sm:$0xff]  }
  0x35   :  { %896 = vmatprep.subr.bf16.mxu0 %v1035_v16  ;;  %v1059_v48 = vld [vmem:[#allocation5 + $0x160] sm:$0xff]   ;;  %v1061_v50 = vld [vmem:[#allocation5 + $0x168] sm:$0xff]   ;;  %v59_v51 = vld [vmem:[#allocation2 + $0x28] sm:$0xff] }
  0x36   :  { %917 = vmatpush3.bf16.msra.mxu1 %v1034_v15  ;;  %v1060_v49 = vld [vmem:[#allocation5 + $0x120] sm:$0xff]   ;;  %v1062_v52 = vld [vmem:[#allocation5 + $0x128] sm:$0xff]   ;;  %v65_v53 = vpack.c.bf16 %v59_v51, %v59_v51  ;;  %v1063_v54 = vld [vmem:[#allocation5 + $0x170] sm:$0xff]  }
  0x37   :  { %918 = vmatprep.subr.bf16.mxu1 %v1037_v18  ;;  %v1064_v55 = vld [vmem:[#allocation5 + $0x130] sm:$0xff]   ;;  %v1065_v56 = vld [vmem:[#allocation5 + $0x178] sm:$0xff]   ;;  %v1069_v63 = vld [vmem:[%s1323_s3 + $0x10] sm:$0xff]  }
  0x38   :  { %897 = vmatpush3.bf16.msra.mxu0 %v1036_v17  ;;  %v1066_v57 = vld [vmem:[#allocation5 + $0x138] sm:$0xff]   ;;  %v58_v58 = vld [vmem:[#allocation2 + $0x20] sm:$0xff]  ;;  %v1070_v0 = vld [vmem:[%s1323_s3 + $0x18] sm:$0xff]  }
  0x39   :  { %898 = vmatprep.subr.bf16.mxu0 %v1039_v20  ;;  %v64_v59 = vpack.c.bf16 %v58_v58, %v58_v58  ;;  %v1067_v60 = vld [vmem:[%s1323_s3] sm:$0xff]   ;;  %v1068_v62 = vld [vmem:[%s1323_s3 + $0x8] sm:$0xff]   ;;  %v1073_v3 = vld [vmem:[%s1323_s3 + $0x30] sm:$0xff]  }
  0x3a   :  { %919 = vmatpush3.bf16.msra.mxu1 %v1038_v19  ;;  %v1071_v1 = vld [vmem:[%s1323_s3 + $0x20] sm:$0xff]   ;;  %v1072_v2 = vld [vmem:[%s1323_s3 + $0x28] sm:$0xff]   ;;  %v1074_v4 = vld [vmem:[%s1323_s3 + $0x38] sm:$0xff]  }
  0x3b   :  { %920 = vmatprep.subr.bf16.mxu1 %v1041_v22  ;;  %v1075_v5 = vld [vmem:[%s1325_s5] sm:$0xff]   ;;  %v1076_v6 = vld [vmem:[%s1325_s5 + $0x8] sm:$0xff]   ;;  %v1077_v7 = vld [vmem:[%s1325_s5 + $0x10] sm:$0xff]  }
  0x3c   :  { %899 = vmatpush3.bf16.msra.mxu0 %v1040_v21  ;;  %v1078_v8 = vld [vmem:[%s1325_s5 + $0x18] sm:$0xff]   ;;  %v1079_v9 = vld [vmem:[%s1325_s5 + $0x20] sm:$0xff]   ;;  %v1080_v10 = vld [vmem:[%s1325_s5 + $0x28] sm:$0xff]  }
  0x3d   :  { %900 = vmatprep.subr.bf16.mxu0 %v1043_v24  ;;  %v821_v12 = vld [vmem:[%s1322_s2] ss:$0 sm:$0xff]  ;;  %v1081_v32 = vld [vmem:[%s1325_s5 + $0x30] sm:$0xff]  }
  0x3e   :  { %921 = vmatpush3.bf16.msra.mxu1 %v1042_v23  ;;  %v870_v34 = vld [vmem:[%s1324_s4] ss:$0 sm:$0xff]  ;;  %s1127_s4 = scalar_lea.vmem %s812_s14, 128 }
  0x3f   :  { %922 = vmatprep.subr.bf16.mxu1 %v1045_v26  ;;  %p1128_p2 = scmp.ne.s32.totalorder %s812_s14, %s1127_s4  ;;  %p1133_p4 = scmp.lt.s32.totalorder %s1127_s4, %s1127_s4 }
  0x40   :  { %901 = vmatpush3.bf16.msra.mxu0 %v1044_v25 }
  0x41   :  { %902 = vmatprep.subr.bf16.mxu0 %v1047_v28  ;;  %p1134_p5 = por %p1133_p4, %p1132_p3 }
  0x42   :  { %923 = vmatpush3.bf16.msra.mxu1 %v1046_v27 }
  0x43   :  { %924 = vmatprep.subr.bf16.mxu1 %v1049_v30  ;;  %p1135_p6 = pnand %p1134_p5, %p1128_p2 }
  0x44   :  { %903 = vmatpush3.bf16.msra.mxu0 %v1048_v29 }
  0x45   :  { %932 = vmatprep.subr.bf16.mxu0 %v1051_v36 }
  0x46   :  { %925 = vmatpush3.bf16.msra.mxu1 %v1050_v33  ;;  %v1082_v33 = vld [vmem:[%s1325_s5 + $0x38] sm:$0xff]  }
  0x47   :  { %490 = vmatmul.mubr.bf16.vlgmr.msra.gmra.mrb[0].mxu0 %v60_v35  ;;  %972 = vmatprep.subr.bf16.mxu1 %v1159_v61 }
  0x48   :  { %933 = vmatpush3.bf16.msra.mxu0 %v1052_v39  ;;  %569 = vmatprep.mubr.bf16.mxu0 %v65_v53 }
  0x49   :  { %530 = vmatmul.mubr.bf16.vlgmr.msra.gmra.mrb[0].mxu1 %v62_v41  ;;  %934 = vmatprep.subr.bf16.mxu0 %v1053_v42  ;;  %v879_v42 = vld [vmem:[%s1326_s6] ss:$0 sm:$0xff] }
  0x4a   :  { %973 = vmatpush3.bf16.msra.mxu1 %v1067_v60  ;;  %988 = vmatprep.mubr.msk.bf16.mxu1 %vm1160_vm0, %v1159_v61 }
  0x4b   :  { %974 = vmatprep.subr.bf16.mxu1 %v1159_v61 }
  0x4c   :  { %935 = vmatpush3.bf16.msra.mxu0 %v1054_v43 }
  0x4d   :  { %936 = vmatprep.subr.bf16.mxu0 %v1055_v44 }
  0x4e   :  { %975 = vmatpush3.bf16.msra.mxu1 %v1068_v62 }
  0x4f   :  { %976 = vmatprep.subr.bf16.mxu1 %v1159_v61 }
  0x50   :  { %937 = vmatpush3.bf16.msra.mxu0 %v1056_v45 }
  0x51   :  { %938 = vmatprep.subr.bf16.mxu0 %v1057_v46 }
  0x52   :  { %977 = vmatpush3.bf16.msra.mxu1 %v1069_v63 }
  0x53   :  { %978 = vmatprep.subr.bf16.mxu1 %v1159_v61 }
  0x54   :  { %939 = vmatpush3.bf16.msra.mxu0 %v1058_v47 }
  0x55   :  { %940 = vmatprep.subr.bf16.mxu0 %v1059_v48 }
  0x56   :  { %979 = vmatpush3.bf16.msra.mxu1 %v1070_v0 }
  0x57   :  { %980 = vmatprep.subr.bf16.mxu1 %v1159_v61 }
  0x58   :  { %941 = vmatpush3.bf16.msra.mxu0 %v1060_v49 }
  0x59   :  { %942 = vmatprep.subr.bf16.mxu0 %v1061_v50 }
  0x5a   :  { %981 = vmatpush3.bf16.msra.mxu1 %v1071_v1 }
  0x5b   :  { %982 = vmatprep.subr.bf16.mxu1 %v1159_v61 }
  0x5c   :  { %943 = vmatpush3.bf16.msra.mxu0 %v1062_v52 }
  0x5d   :  { %944 = vmatprep.subr.bf16.mxu0 %v1063_v54 }
  0x5e   :  { %983 = vmatpush3.bf16.msra.mxu1 %v1072_v2 }
  0x5f   :  { %984 = vmatprep.subr.bf16.mxu1 %v1159_v61 }
  0x60   :  { %945 = vmatpush3.bf16.msra.mxu0 %v1064_v55 }
  0x61   :  { %946 = vmatprep.subr.bf16.mxu0 %v1065_v56 }
  0x62   :  { %985 = vmatpush3.bf16.msra.mxu1 %v1073_v3 }
  0x63   :  { %986 = vmatprep.subr.bf16.mxu1 %v1159_v61 }
  0x64   :  { %947 = vmatpush3.bf16.msra.mxu0 %v1066_v57 }
  0x65   :  { %992 = vmatprep.subr.bf16.mxu0 %v1159_v61 }
  0x66   :  { %987 = vmatpush3.bf16.msra.mxu1 %v1074_v4 }
  0x67   :  { %570 = vmatmul.mubr.bf16.vlgmr.msra.gmra.mrb[4].mxu0 %v64_v59 }
  0x68   :  { %1008 = vmatprep.mubr.msk.bf16.mxu0 %vm1160_vm0, %v1159_v61  ;;  %993 = vmatpush3.bf16.msra.mxu0 %v1075_v5 }
  0x69   :  { %994 = vmatprep.subr.bf16.mxu0 %v1159_v61 }
  0x6c   :  { %995 = vmatpush3.bf16.msra.mxu0 %v1076_v6 }
  0x6d   :  { %996 = vmatprep.subr.bf16.mxu0 %v1159_v61 }
  0x70   :  { %997 = vmatpush3.bf16.msra.mxu0 %v1077_v7 }
  0x71   :  { %998 = vmatprep.subr.bf16.mxu0 %v1159_v61 }
  0x74   :  { %999 = vmatpush3.bf16.msra.mxu0 %v1078_v8 }
  0x75   :  { %1000 = vmatprep.subr.bf16.mxu0 %v1159_v61 }
  0x78   :  { %1001 = vmatpush3.bf16.msra.mxu0 %v1079_v9 }
  0x79   :  { %1002 = vmatprep.subr.bf16.mxu0 %v1159_v61 }
  0x7c   :  { %1003 = vmatpush3.bf16.msra.mxu0 %v1080_v10 }
  0x7d   :  { %1004 = vmatprep.subr.bf16.mxu0 %v1159_v61 }
  0x80   :  { %1005 = vmatpush3.bf16.msra.mxu0 %v1081_v32 }
  0x81   :  { %1006 = vmatprep.subr.bf16.mxu0 %v1159_v61 }
  0x84   :  { %1007 = vmatpush3.bf16.msra.mxu0 %v1082_v33 }
 0x11a   :  { %v904_v11 = vpop.f32.mrb[0].mxu0 }
 0x11b   :  { %v905_v13 = vpop.f32.mrb[1].mxu0 }
 0x11c   :  { %v906_v14 = vadd.f32 %v905_v13, %v904_v11  ;;  %v907_v15 = vpop.f32.mrb[2].mxu0  ;;  %v926_v16 = vpop.f32.mrb[0].mxu1 }
 0x11d   :  { %v908_v17 = vpop.f32.mrb[3].mxu0  ;;  %v927_v19 = vpop.f32.mrb[1].mxu1 }
 0x11e   :  { %v492_v18 = vadd.f32 %v906_v14, %v821_v12  ;;  %v928_v20 = vadd.f32 %v927_v19, %v926_v16  ;;  %v929_v21 = vpop.f32.mrb[2].mxu1 }
 0x11f   :  { %v930_v22 = vpop.f32.mrb[3].mxu1 }
 0x120   :  { %v532_v23 = vadd.f32 %v928_v20, %v492_v18 }
 0x13a   :  { %v948_v24 = vpop.f32.mrb[4].mxu0 }
 0x13b   :  { %v949_v25 = vpop.f32.mrb[5].mxu0 }
 0x13c   :  { %v950_v26 = vadd.f32 %v949_v25, %v948_v24  ;;  %v951_v27 = vpop.f32.mrb[6].mxu0 }
 0x13d   :  { %v952_v28 = vpop.f32.mrb[7].mxu0 }
 0x13e   :  { %v572_v29 = vadd.f32 %v950_v26, %v532_v23 }
 0x140   :  { %v577_v30 = vmax.f32 %v572_v29, 0.0 }
 0x142   :  { %v578_v31 = vpack.c.bf16 %v577_v30, %v577_v30 }
 0x144   :  { %989 = vmatmul.mubr.bf16.vlgmr.msra.gmra.mrb[4].mxu1 %v578_v31 }
 0x217   :  { %v684_v35 = vpop.f32.mrb[4].mxu1 }
 0x218   :  { %v685_v36 = vadd.f32 %v870_v34, %v684_v35  ;;  %v990_v37 = vpop.f32.mrb[5].mxu1 }
 0x219   :  { %v687_v38 = vpop.f32.mrb[6].mxu1 }
 0x21a   :  { %v690_v39 = vmax.f32 %v685_v36, 0.0  ;;  %v991_v40 = vpop.f32.mrb[7].mxu1 }
 0x21c   :  { %v691_v41 = vpack.c.bf16 %v690_v39, %v690_v39 }
 0x21e   :  { %1009 = vmatmul.mubr.bf16.vlgmr.msra.gmra.mrb[8].mxu0 %v691_v41 }
 0x2f1   :  { %v797_v43 = vpop.f32.mrb[8].mxu0 }
 0x2f2   :  { %v798_v44 = vadd.f32 %v879_v42, %v797_v43  ;;  %v1010_v45 = vpop.f32.mrb[9].mxu0 }
 0x2f3   :  { %v800_v46 = vpop.f32.mrb[10].mxu0 }
 0x2f4   :  { %v1011_v47 = vpop.f32.mrb[11].mxu0  ;;  %804 = vst.msk [vmem:[#allocation7] sm:$0xff] %vm803_vm1, %v798_v44 }
 0x2f5   :  { %1138 = shalt.err (!%p1135_p6)
}
 0x2f6   :  { %s1139_s6 = scalar_lea.hbm %s1327_s7, 128 }
 0x2f7   :  { %p1140_p7 = scmp.ne.s32.totalorder %s1327_s7, %s1139_s6  ;;  %p1143_p8 = scmp.lt.u32.totalorder %s1139_s6, %s1327_s7 }
 0x2f9   :  { %p1145_p9 = pnand %p1143_p8, %p1140_p7 }
 0x2fb   :  { %1148 = shalt.err (!%p1145_p9)
}
 0x2fc   :  { %814 = dma.vmem_to_hbm [thread:$0]  %s812_s14, 128, %s1327_s7, [#allocation4]  }
 0x2fd   :  { %1153 = dma.done.wait [#allocation4], 128  }
 0x2fe   :  { %1154 = vsyncadd [#allocation4], 4294967168 }
 0x2ff   :  { %818 = vsyncpa [#allocation3], 1 }
 0x300   :  { %819 = vsyncpa [#allocation6], 1 }
 0x301   :  { %820 = vsyncpa [#allocation4], 1 }

</bundles_post_ra>
